<compile_context>
chip_gen: v6e
topology: v6e:2x2x1
jax: 0.10.0
libtpu: 0.0.40
codegen_flags: <defaults>
</compile_context>

<pallas_src>
import functools

import jax
import jax.numpy as jnp
from jax.experimental import pallas as pl
from jax.experimental.pallas import tpu as pltpu

BN_EPS = 1e-5  # nn.BatchNorm2d default

_VMEM_LIMIT_BYTES = 48 << 20   # safe on v7x (64 MiB physical); raises v5e/v6e default
_TILE_BUDGET_BYTES = 40 << 20  # budget for 2x(in)+2x(out) double-buffered x tiles


# --------------------------------------------------------------------------
# Fused path: one batch chunk (Nb, C, HW) per grid step; pool + MLP + modulate.
# --------------------------------------------------------------------------
def _csm_kernel(x_ref, w1t_ref, b1_ref, w2t_ref, o_ref, *, inv_hw):
    # x_ref : (Nb, C, HW)   current batch chunk (full spatial extent)
    # w1t_ref: (C, Cr)      BN-folded conv1 weight, transposed
    # b1_ref : (1, Cr)      BN-folded conv1 bias
    # w2t_ref: (Cr, C)      conv2 weight, transposed
    # o_ref : (Nb, C, HW)
    # Global average pool over the spatial (lane) axis.
    pooled = jnp.sum(x_ref[...].astype(jnp.float32), axis=2) * inv_hw     # (Nb, C)

    # 1x1 conv #1 with folded BN, then ReLU.
    h = jnp.dot(pooled, w1t_ref[...], preferred_element_type=jnp.float32)  # (Nb, Cr)
    h = jnp.maximum(h + b1_ref[...], 0.0)

    # 1x1 conv #2.
    h2 = jnp.dot(h, w2t_ref[...], preferred_element_type=jnp.float32)      # (Nb, C)

    # Double sigmoid, then residual self-modulation as x * (1 + x_w).
    m = 1.0 + jax.nn.sigmoid(jax.nn.sigmoid(h2))                           # (Nb, C)

    # Broadcast (Nb, C, 1) over the spatial axis; cast the small tensor only.
    o_ref[...] = x_ref[...] * m[:, :, None].astype(o_ref.dtype)


def _pick_nb(n, c, hw, bytes_per_elem):
    """Largest divisor of n whose double-buffered in+out tiles fit the budget,
    keeping >= 2 grid steps when n >= 2 (v7x has 2 TensorCores)."""
    per_batch = 4 * c * hw * bytes_per_elem  # 2 in-bufs + 2 out-bufs per element
    max_nb = max(1, _TILE_BUDGET_BYTES // per_batch)
    if n >= 2:
        max_nb = min(max_nb, max(1, n // 2))
    max_nb = min(max_nb, n)
    nb = 1
    for d in range(1, max_nb + 1):
        if n % d == 0:
            nb = d
    return nb


# --------------------------------------------------------------------------
# Fallback path (very large spatial): pool+MLP in plain JAX, modulation tiled.
# --------------------------------------------------------------------------
def _modulate_kernel(x_ref, m_ref, o_ref):
    # x_ref: (1, C, HWb), m_ref: (1, C, 1) already in output dtype.
    o_ref[...] = x_ref[...] * m_ref[...]


def _csm_large_spatial(x_flat, w1t, b1, w2t, hw):
    # TODO(synk): this path reads x twice (XLA mean + kernel); acceptable only
    # when a single batch element cannot fit in VMEM for the fused path.
    N, C, HW = x_flat.shape
    pooled = jnp.mean(x_flat.astype(jnp.float32), axis=2)            # (N, C)
    h = jnp.maximum(pooled @ w1t + b1, 0.0)                          # (N, Cr)
    h2 = h @ w2t                                                     # (N, C)
    m = (1.0 + jax.nn.sigmoid(jax.nn.sigmoid(h2))).astype(x_flat.dtype)
    m = m.reshape(N, C, 1)

    itemsize = x_flat.dtype.itemsize
    hwb = max(128, (_TILE_BUDGET_BYTES // (4 * C * itemsize)) // 128 * 128)
    hwb = min(hwb, ((HW + 127) // 128) * 128)
    grid = (N, pl.cdiv(HW, hwb))

    return pl.pallas_call(
        _modulate_kernel,
        out_shape=jax.ShapeDtypeStruct((N, C, HW), x_flat.dtype),
        grid_spec=pltpu.PrefetchScalarGridSpec(
            num_scalar_prefetch=0,
            grid=grid,
            in_specs=[
                pl.BlockSpec((1, C, hwb), lambda n, s: (n, 0, s)),
                pl.BlockSpec((1, C, 1), lambda n, s: (n, 0, 0)),
            ],
            out_specs=pl.BlockSpec((1, C, hwb), lambda n, s: (n, 0, s)),
        ),
        compiler_params=pltpu.CompilerParams(
            dimension_semantics=("parallel", "parallel"),
            vmem_limit_bytes=_VMEM_LIMIT_BYTES),
    )(x_flat, m)


# --------------------------------------------------------------------------
# Public entry point.
# --------------------------------------------------------------------------
def csm_forward(x, w1, w2, bn):
    """x: (N, C, H, W); w1: (C//f, C); w2: (C, C//f); bn: (C//f, 4) with
    columns [gamma, beta, running_mean, running_var] (eval-mode BN)."""
    N, C, H, W = x.shape
    HW = H * W
    Cr = w1.shape[0]

    # Fold eval-mode BatchNorm into conv1 on the wrapper side (zero kernel cost).
    gamma = bn[:, 0].astype(jnp.float32)
    beta = bn[:, 1].astype(jnp.float32)
    mean = bn[:, 2].astype(jnp.float32)
    var = bn[:, 3].astype(jnp.float32)
    scale = gamma * jax.lax.rsqrt(var + BN_EPS)                  # (Cr,)
    w1t = (w1.astype(jnp.float32) * scale[:, None]).T            # (C, Cr)
    b1 = (beta - mean * scale).reshape(1, Cr)                    # (1, Cr)
    w2t = w2.astype(jnp.float32).T                               # (Cr, C)

    # (N, C, H, W) -> (N, C, HW) is a layout-preserving reshape (free bitcast).
    x_flat = x.reshape(N, C, HW)
    itemsize = x.dtype.itemsize

    if 4 * C * HW * itemsize > _TILE_BUDGET_BYTES:
        out_flat = _csm_large_spatial(x_flat, w1t, b1, w2t, HW)
        return out_flat.reshape(N, C, H, W)

    Nb = _pick_nb(N, C, HW, itemsize)
    grid = (N // Nb,)

    kernel = functools.partial(_csm_kernel, inv_hw=1.0 / float(HW))

    out_flat = pl.pallas_call(
        kernel,
        out_shape=jax.ShapeDtypeStruct((N, C, HW), x.dtype),
        grid_spec=pltpu.PrefetchScalarGridSpec(
            num_scalar_prefetch=0,
            grid=grid,
            in_specs=[
                pl.BlockSpec((Nb, C, HW), lambda n: (n, 0, 0)),
                pl.BlockSpec((C, Cr), lambda n: (0, 0)),
                pl.BlockSpec((1, Cr), lambda n: (0, 0)),
                pl.BlockSpec((Cr, C), lambda n: (0, 0)),
            ],
            out_specs=pl.BlockSpec((Nb, C, HW), lambda n: (n, 0, 0)),
        ),
        compiler_params=pltpu.CompilerParams(
            dimension_semantics=("parallel",),
            vmem_limit_bytes=_VMEM_LIMIT_BYTES),
    )(x_flat, w1t, b1, w2t)

    return out_flat.reshape(N, C, H, W)


def csm_ref(x, w1, w2, bn):
    """Pure-JAX reference mirroring the PyTorch forward (eval-mode BN)."""
    x_avg = x.mean(axis=(2, 3), keepdims=True)                   # (N, C, 1, 1)
    h = jnp.einsum('oc,ncij->noij', w1, x_avg)                   # (N, Cr, 1, 1)
    gamma = bn[:, 0].reshape(1, -1, 1, 1)
    beta = bn[:, 1].reshape(1, -1, 1, 1)
    mean = bn[:, 2].reshape(1, -1, 1, 1)
    var = bn[:, 3].reshape(1, -1, 1, 1)
    h = gamma * (h - mean) * jax.lax.rsqrt(var + BN_EPS) + beta
    h = jnp.maximum(h, 0.0)
    h2 = jnp.einsum('co,noij->ncij', w2, h)                      # (N, C, 1, 1)
    x_w = jax.nn.sigmoid(jax.nn.sigmoid(h2))
    return x + x * x_w


if __name__ == "__main__":
    # Small shapes consistent with the module: hidden_dim=32, factor=4.
    N, C, H, W = 2, 32, 16, 16
    factor = 4
    Cr = C // factor

    key = jax.random.PRNGKey(0)
    kx, kw1, kw2, kg, kb, km, kv = jax.random.split(key, 7)

    x = jax.random.normal(kx, (N, C, H, W), dtype=jnp.float32)
    # Conv2d weights (out_ch, in_ch) for the 1x1 convolutions (bias=False).
    w1 = jax.random.normal(kw1, (Cr, C), dtype=jnp.float32) * 0.1
    w2 = jax.random.normal(kw2, (C, Cr), dtype=jnp.float32) * 0.1
    # BatchNorm2d params (eval-mode running stats), deterministic & non-trivial.
    gamma = 1.0 + 0.1 * jax.random.normal(kg, (Cr,), dtype=jnp.float32)
    beta = 0.1 * jax.random.normal(kb, (Cr,), dtype=jnp.float32)
    run_mean = 0.1 * jax.random.normal(km, (Cr,), dtype=jnp.float32)
    run_var = jnp.abs(jax.random.normal(kv, (Cr,), dtype=jnp.float32)) + 0.5
    bn = jnp.stack([gamma, beta, run_mean, run_var], axis=1)     # (Cr, 4)

    out = jax.block_until_ready(csm_forward(x, w1, w2, bn))
    ref = jax.block_until_ready(csm_ref(x, w1, w2, bn))

    assert out.shape == (N, C, H, W)
    assert jnp.allclose(out, ref, atol=1e-5, rtol=1e-5), (
        float(jnp.max(jnp.abs(out - ref))))
    print("KERNEL_OK")
</pallas_src>

<mosaic_0001>
module attributes {stable_mosaic.version = 11 : i64} {
  func.func @_csm_kernel(%arg0: i32, %arg1: memref<1x32x256xf32, #tpu.memory_space<vmem>>, %arg2: memref<32x8xf32, #tpu.memory_space<vmem>>, %arg3: memref<1x8xf32, #tpu.memory_space<vmem>>, %arg4: memref<8x32xf32, #tpu.memory_space<vmem>>, %arg5: memref<1x32x256xf32, #tpu.memory_space<vmem>>) attributes {dimension_semantics = [#tpu.dimension_semantics<parallel>], iteration_bounds = array<i64: 2>, scalar_prefetch = 0 : i64, scratch_operands = 0 : i64, tpu.core_type = #tpu.core_type<tc>, window_params = [{transform_indices = @transform_0, window_bounds = array<i64: 1, 32, 256>}, {pipeline_mode = #tpu.pipeline_mode<synchronous>, transform_indices = @transform_1, window_bounds = array<i64: 32, 8>}, {pipeline_mode = #tpu.pipeline_mode<synchronous>, transform_indices = @transform_2, window_bounds = array<i64: 1, 8>}, {pipeline_mode = #tpu.pipeline_mode<synchronous>, transform_indices = @transform_3, window_bounds = array<i64: 8, 32>}, {transform_indices = @transform_4, window_bounds = array<i64: 1, 32, 256>}]} {
    %c0 = arith.constant 0 : index
    %c0_0 = arith.constant 0 : index
    %c0_1 = arith.constant 0 : index
    %0 = vector.load %arg1[%c0, %c0_0, %c0_1] : memref<1x32x256xf32, #tpu.memory_space<vmem>>, vector<1x32x256xf32>
    %cst = arith.constant dense<0.000000e+00> : vector<1x32xf32>
    %1 = vector.multi_reduction <add>, %0, %cst [2] : vector<1x32x256xf32> to vector<1x32xf32>
    %cst_2 = arith.constant 3.906250e-03 : f32
    %2 = vector.broadcast %cst_2 : f32 to vector<1x32xf32>
    %3 = arith.mulf %1, %2 : vector<1x32xf32>
    %c0_3 = arith.constant 0 : index
    %c0_4 = arith.constant 0 : index
    %4 = vector.load %arg2[%c0_3, %c0_4] : memref<32x8xf32, #tpu.memory_space<vmem>>, vector<32x8xf32>
    %cst_5 = arith.constant dense<0.000000e+00> : vector<1x8xf32>
    %5 = tpu.matmul %3, %4, %cst_5 {dimension_numbers = #tpu.dot_dimension_numbers<[1], [0], [0], [1], [0, 0, 1, 1], [], []>} : vector<1x32xf32>, vector<32x8xf32>, vector<1x8xf32> -> vector<1x8xf32>
    %c0_6 = arith.constant 0 : index
    %c0_7 = arith.constant 0 : index
    %6 = vector.load %arg3[%c0_6, %c0_7] : memref<1x8xf32, #tpu.memory_space<vmem>>, vector<1x8xf32>
    %7 = arith.addf %5, %6 : vector<1x8xf32>
    %cst_8 = arith.constant 0.000000e+00 : f32
    %8 = vector.broadcast %cst_8 : f32 to vector<1x8xf32>
    %9 = arith.maximumf %7, %8 : vector<1x8xf32>
    %c0_9 = arith.constant 0 : index
    %c0_10 = arith.constant 0 : index
    %10 = vector.load %arg4[%c0_9, %c0_10] : memref<8x32xf32, #tpu.memory_space<vmem>>, vector<8x32xf32>
    %cst_11 = arith.constant dense<0.000000e+00> : vector<1x32xf32>
    %11 = tpu.matmul %9, %10, %cst_11 {dimension_numbers = #tpu.dot_dimension_numbers<[1], [0], [0], [1], [0, 0, 1, 1], [], []>} : vector<1x8xf32>, vector<8x32xf32>, vector<1x32xf32> -> vector<1x32xf32>
    %12 = arith.negf %11 : vector<1x32xf32>
    %13 = math.exp %12 : vector<1x32xf32>
    %cst_12 = arith.constant 1.000000e+00 : f32
    %14 = vector.broadcast %cst_12 : f32 to vector<1x32xf32>
    %15 = arith.addf %14, %13 : vector<1x32xf32>
    %16 = arith.divf %14, %15 : vector<1x32xf32>
    %17 = arith.negf %16 : vector<1x32xf32>
    %18 = math.exp %17 : vector<1x32xf32>
    %cst_13 = arith.constant 1.000000e+00 : f32
    %19 = vector.broadcast %cst_13 : f32 to vector<1x32xf32>
    %20 = arith.addf %19, %18 : vector<1x32xf32>
    %21 = arith.divf %19, %20 : vector<1x32xf32>
    %cst_14 = arith.constant 1.000000e+00 : f32
    %22 = vector.broadcast %cst_14 : f32 to vector<1x32xf32>
    %23 = arith.addf %22, %21 : vector<1x32xf32>
    %c0_15 = arith.constant 0 : index
    %c0_16 = arith.constant 0 : index
    %c0_17 = arith.constant 0 : index
    %24 = vector.load %arg1[%c0_15, %c0_16, %c0_17] : memref<1x32x256xf32, #tpu.memory_space<vmem>>, vector<1x32x256xf32>
    %25 = vector.shape_cast %23 : vector<1x32xf32> to vector<1x32x1xf32>
    %26 = vector.broadcast %25 : vector<1x32x1xf32> to vector<1x32x256xf32>
    %27 = arith.mulf %24, %26 : vector<1x32x256xf32>
    %c0_18 = arith.constant 0 : index
    %c0_19 = arith.constant 0 : index
    %c0_20 = arith.constant 0 : index
    %28 = vector.load %arg5[%c0_18, %c0_19, %c0_20] : memref<1x32x256xf32, #tpu.memory_space<vmem>>, vector<1x32x256xf32>
    tpu.vector_store %arg5[%c0_18, %c0_19, %c0_20], %27 {strides = array<i32>} : memref<1x32x256xf32, #tpu.memory_space<vmem>>, vector<1x32x256xf32>,
    return
  }
  func.func @transform_0(%arg0: i32) -> (i32, i32, i32) {
    %c0_i32 = arith.constant 0 : i32
    %c0_i32_0 = arith.constant 0 : i32
    %c0_i32_1 = arith.constant 0 : i32
    return %arg0, %c0_i32, %c0_i32_0 : i32, i32, i32
  }
  func.func @transform_1(%arg0: i32) -> (i32, i32) {
    %c0_i32 = arith.constant 0 : i32
    %c0_i32_0 = arith.constant 0 : i32
    %c0_i32_1 = arith.constant 0 : i32
    return %c0_i32, %c0_i32_0 : i32, i32
  }
  func.func @transform_2(%arg0: i32) -> (i32, i32) {
    %c0_i32 = arith.constant 0 : i32
    %c0_i32_0 = arith.constant 0 : i32
    %c0_i32_1 = arith.constant 0 : i32
    return %c0_i32, %c0_i32_0 : i32, i32
  }
  func.func @transform_3(%arg0: i32) -> (i32, i32) {
    %c0_i32 = arith.constant 0 : i32
    %c0_i32_0 = arith.constant 0 : i32
    %c0_i32_1 = arith.constant 0 : i32
    return %c0_i32, %c0_i32_0 : i32, i32
  }
  func.func @transform_4(%arg0: i32) -> (i32, i32, i32) {
    %c0_i32 = arith.constant 0 : i32
    %c0_i32_0 = arith.constant 0 : i32
    %c0_i32_1 = arith.constant 0 : i32
    return %arg0, %c0_i32, %c0_i32_0 : i32, i32, i32
  }
}

</mosaic_0001>

<bundles_post_ra>
// kernel: tpu_custom_call.1
= control target key start
LH: loop header
LB: loop body
LE: loop exit
PB: predicated region body
PF: predicated region fallthrough
CT: control target
= control target key end

     0   :  { %9 = vsyncpa [#allocation3], 0  ;;  %s998_s0 = inlined_call_operand.hbm [shape: f32[2,32,256], index: 0, kind: input, shape index: {}]   ;;  %s999_s1 = inlined_call_operand.vmem [shape: f32[32,8], index: 1, kind: input, shape index: {}]   ;;  %s1000_s2 = inlined_call_operand.vmem [shape: f32[1,8], index: 2, kind: input, shape index: {}]   ;;  %s1001_s3 = inlined_call_operand.vmem [shape: f32[8,32], index: 3, kind: input, shape index: {}]   ;;  %s1002_s4 = inlined_call_operand.hbm [shape: f32[2,32,256], index: 4, kind: output, shape index: {}]  }
   0x1   :  { %11 = vsyncpa [#allocation3 + $0x1], 0 }
   0x2   :  { %12 = vsyncpa [#allocation4], 0 }
   0x3   :  { %14 = vsyncpa [#allocation4 + $0x1], 0  ;;  %s790_s15 = smov 0   ;;  %s792_s16 = smov 0  }
   0x4   :  { %s794_s17 = smov 0   ;;  %s796_s18 = smov 0  }
   0x5 LB: > { %s811_s19 = sadd.s32 4294967295, %s755_s18   ;;  %s560_s20 = sadd.s32 4294967294, %s755_s18   ;;  %s755_s18 = sphi %s796_s18, %s1017_s18   ;;  %s751_s17 = sphi %s794_s17, %s1016_s17   ;;  %s747_s16 = sphi %s792_s16, %s1015_s16   ;;  %s743_s15 = sphi %s790_s15, %s1014_s15  }
   0x6   : > { %s815_s21 = sadd.s32 1, %s755_s18   ;;  %s27_s22 = sadd.s32 1, %s751_s17 }
   0x7   : > { %s24_s23 = ssub.s32 %s755_s18, %s815_s21  ;;  %p34_p0 = scmp.ne.s32.totalorder %s751_s17, %s747_s16 }
   0x8   : > { %p25_p1 = scmp.eq.s32.totalorder %s24_s23, 0  ;;  %p35_p2 = scmp.eq.s32.totalorder %s755_s18, 0 }
   0x9   : > { %p40_p3 = scmp.ne.s32.totalorder %s747_s16, %s743_s15  ;;  %p41_p4 = scmp.eq.s32.totalorder %s811_s19, 0 }
   0xa   : > { %s827_s24 = scalar_select %p25_p1, %s751_s17, %s27_s22  }
   0xb   : > { %p829_p5 = por %p35_p2, %p34_p0  ;;  %p833_p6 = por %p41_p4, %p40_p3 }
   0xc   : > { %p127_p7 = scmp.eq.s32.totalorder %s811_s19, 1  ;;  %p133_p8 = scmp.eq.s32.totalorder %s560_s20, 1 }
   0xd   : > { %s1006_s26 = scalar_select %p833_p6, 1, 0 }
   0xe   : > { %p615_p10 = scmp.lt.s32.totalorder %s755_s18, 2  ;;  %p840_p11 = por %p127_p7, %p34_p0 }
   0xf   : > { %p844_p12 = por %p133_p8, %p40_p3  ;;  %s162_s29 = sand.u32 1, %s751_s17  }
  0x10   : > { %s1007_s27 = scalar_select %p840_p11, 1, 0 }
  0x11   : > { %s1008_s28 = scalar_select %p844_p12, 1, 0 }
  0x12   : > { %s578_s30 = sshll.u32 %s755_s18, 10  ;;  %s563_s5 = sshll.u32 %s162_s29, 6 }
  0x13   : > { %s853_s8 = scalar_lea.hbm %s998_s0, %s578_s30  ;;  %s166_s9 = scalar_lea.vmem [#allocation2], %s563_s5 }
  0x14   : > { %s173_s10 = sshll.u32 %s166_s9, 4  ;;  %p857_p13 = pnand %p615_p10, %p829_p5  ;;  %s861_s10 = int_to_ptr.vmem [resolvable:$true] %s173_s10 }
  0x15   : > { %s863_s12 = scalar_lea.sflag [#allocation3], %s162_s29  ;;  %s663_s13 = scalar_lea.hbm %s853_s8, 1024 }
  0x16   : > { %p664_p0 = scmp.ne.s32.totalorder %s853_s8, %s663_s13  ;;  %p665_p1 = pneg %p857_p13 }
  0x17   : > { %s668_s22 = scalar_lea.hbm %s998_s0, 2048  ;;  %p669_p4 = scmp.lt.s32.totalorder %s853_s8, %s998_s0 }
  0x18   : > { %p666_p2 = pnand %p665_p1, %p664_p0  ;;  %p670_p5 = scmp.lt.s32.totalorder %s668_s22, %s663_s13 }
  0x1a   : > { %p667_p3 = pneg %p666_p2  ;;  %p671_p7 = por %p670_p5, %p669_p4 }
  0x1c   : > { %p672_p8 = pnand %p671_p7, %p667_p3 }
  0x1e   : > { %675 = shalt.err (!%p672_p8)
}
  0x1f   : > { %s676_s29 = scalar_lea.vmem %s861_s10, 1024  ;;  %s757_s30 = smov [#allocation2]  }
  0x20   : > { %p677_p10 = scmp.ne.s32.totalorder %s861_s10, %s676_s29  ;;  %s681_s5 = sshll.u32 %s757_s30, 4  ;;  %s682_s5 = int_to_ptr.vmem [resolvable:$false] %s681_s5 }
  0x21   : > { %s683_s6 = scalar_lea.vmem %s682_s5, 2048  ;;  %p684_p2 = scmp.lt.s32.totalorder %s861_s10, %s682_s5 }
  0x22   : > { %p679_p9 = pnand %p677_p10, %p665_p1  ;;  %p685_p12 = scmp.lt.s32.totalorder %s683_s6, %s676_s29 }
  0x24   : > { %p680_p0 = pneg %p679_p9  ;;  %p686_p11 = por %p685_p12, %p684_p2 }
  0x26   : > { %p687_p6 = pnand %p686_p11, %p680_p0 }
  0x28   : > { %690 = shalt.err (!%p687_p6)
}
  0x29   : > { %s758_s7 = smov 256   ;;  %s759_s9 = smov 16  }
  0x2a   : > { %610 = dma.hbm_to_vmem [thread:$0]  (!%p857_p13), %s853_s8, 1024, %s861_s10, %s863_s12, %s758_s7, %s758_s7, %s759_s9  }
  0x2b   : > { %p566_p9 = scmp.ge.s32.totalorder %s755_s18, 1  ;;  %p181_p1 = scmp.lt.s32.totalorder %s755_s18, 3 }
  0x2d   : > { %p182_p3 = pnand %p566_p9, %p181_p1 }
  0x2e   : > { %s887_s13 = sand.u32 (!%p182_p3), 1, %s747_s16   ;;  %p1010_p6 = scmp.ne.s32.totalorder (!%p182_p3), %s1006_s26, 0 }
  0x2f   : > { %185 = sbr.rel (%p182_p3) target bundleno = 802 (0x322), region = 36  ;;  %s567_s14 = sshll.u32 (!%p182_p3), %s887_s13, 6 }
  0x30   : > { %s188_s20 = scalar_lea.sflag (!%p182_p3), [#allocation3], %s887_s13  ;;  %s191_s22 = scalar_lea.vmem (!%p182_p3), [#allocation2], %s567_s14 }
  0x34   : > { %734 = dma.done.wait (%p1010_p6), %s188_s20, 1024  }
  0x35   : > { %736 = vsyncadd (%p1010_p6), %s188_s20, 4294966272  ;;  %v897_v0 = vld [vmem:[%s191_s22] sm:$0xff]  ;;  %v899_v1 = vld [vmem:[%s191_s22 + $0x8] sm:$0xff]  ;;  %v760_v12 = vmov 0.0   ;;  %vm761_vm0 = vmmov 0   ;;  %v249_v17 = vlaneseq  ;;  %vm260_vm1 = vcmask 130112  }
  0x36   : > { %v901_v2 = vld [vmem:[%s191_s22 + $0x20] sm:$0xff]  ;;  %v224_v3 = vadd.f32 %v899_v1, %v897_v0  ;;  %v905_v4 = vld [vmem:[%s191_s22 + $0x28] sm:$0xff]  ;;  %v907_v5 = vld [vmem:[%s191_s22 + $0x10] sm:$0xff]  ;;  %587 = vmatprep.subr.mxu0 %v760_v12  ;;  %598 = vmatprep.subr.mxu1 %v760_v12  ;;  %vm267_vm2 = vcmask 195712   ;;  %vm274_vm3 = vcmask 261312   ;;  %vm276_vm4 = vcmask 261120  }
  0x37   : > { %v909_v6 = vld [vmem:[%s191_s22 + $0x18] sm:$0xff]  ;;  %v230_v7 = vadd.f32 %v905_v4, %v901_v2  ;;  %v913_v8 = vld [vmem:[%s191_s22 + $0x30] sm:$0xff]  ;;  %v241_v15 = vld [vmem:[%s999_s1 + $0x8] sm:$0xff]  ;;  %595 = vmatprep.mubr.msk.f32.mxu0 %vm761_vm0, %v760_v12  ;;  %600 = vmatprep.mubr.msk.f32.mxu1 %vm761_vm0, %v760_v12  ;;  %v250_v18 = vand.u32 127, %v249_v17  ;;  %v252_v19 = vshrl.u32 %v249_v17, 7  ;;  %vm351_vm5 = vcmask 64512  }
  0x38   : > { %v915_v9 = vld [vmem:[%s191_s22 + $0x38] sm:$0xff]  ;;  %225 = vadd.xlane.f32.xlu0 %v224_v3  ;;  %v227_v10 = vadd.f32 %v909_v6, %v907_v5  ;;  %v242_v14 = vld [vmem:[%s999_s1 + $0x10] sm:$0xff]  ;;  %v240_v16 = vld [vmem:[%s999_s1] sm:$0xff]  ;;  %s215_s9 = scalar_lea.vmem [#allocation5], %s567_s14  ;;  %s579_s22 = sshll.u32 %s811_s19, 10 }
  0x39   : > { %231 = vadd.xlane.f32.xlu1 %v230_v7  ;;  %v233_v11 = vadd.f32 %v915_v9, %v913_v8  ;;  %v243_v13 = vld [vmem:[%s999_s1 + $0x18] sm:$0xff]  ;;  %v255_v20 = vadd.s32 4294967288, %v250_v18  ;;  %v262_v22 = vadd.s32 4294967280, %v250_v18  ;;  %v269_v23 = vadd.s32 4294967272, %v250_v18  ;;  %v350_v42 = vld [vmem:[%s1001_s3] sm:$0xff]  ;;  %s487_s20 = sshll.u32 %s215_s9, 4  ;;  %s953_s8 = scalar_lea.hbm %s1002_s4, %s579_s22  ;;  %s948_s20 = int_to_ptr.vmem [resolvable:$true] %s487_s20 }
  0x3a   : > { %588 = vmatpush3.msra.mxu0 %v243_v13  ;;  %v253_v25 = vsub.s32 %v250_v18, %v252_v19  ;;  %599 = vmatpush3.msra.mxu1 %v350_v42  ;;  %v244_v43 = vld [vmem:[%s1000_s2] sm:$0x1]  ;;  %v440_v57 = vsub.s32 0, %v252_v19  ;;  %s474_s19 = scalar_lea.sflag [#allocation4], %s887_s13  ;;  %s691_s10 = scalar_lea.vmem %s948_s20, 1024 }
  0x3b   : > { %589 = vmatprep.subr.mxu0 %v760_v12  ;;  %v258_v27 = vsub.s32 %v255_v20, %v252_v19  ;;  %v265_v28 = vsub.s32 %v262_v22, %v252_v19  ;;  %v272_v31 = vsub.s32 %v269_v23, %v252_v19  ;;  %p692_p11 = scmp.ne.s32.totalorder %s948_s20, %s691_s10  ;;  %p1011_p12 = scmp.ne.s32.totalorder %s1007_s27, 0 }
  0x3c   : > { %228 = vadd.xlane.f32.xlu0 %v227_v10  ;;  %590 = vmatpush3.msra.mxu0 %v242_v14  ;;  %s762_s11 = smov [#allocation5]  }
  0x3d   : > { %234 = vadd.xlane.f32.xlu1 %v233_v11  ;;  %591 = vmatprep.subr.mxu0 %v760_v12  ;;  %p693_p13 = pnand %p692_p11, %p1011_p12  ;;  %s695_s12 = sshll.u32 %s762_s11, 4  ;;  %s696_s12 = int_to_ptr.vmem [resolvable:$false] %s695_s12 }
  0x3e   : > { %592 = vmatpush3.msra.mxu0 %v241_v15  ;;  %s697_s23 = scalar_lea.vmem %s696_s12, 2048  ;;  %p698_p5 = scmp.lt.s32.totalorder %s948_s20, %s696_s12 }
  0x3f   : > { %593 = vmatprep.subr.mxu0 %v760_v12  ;;  %p694_p4 = pneg %p693_p13  ;;  %p699_p7 = scmp.lt.s32.totalorder %s697_s23, %s691_s10 }
  0x40   : > { %594 = vmatpush3.msra.mxu0 %v240_v16 }
  0x41   : > { %p700_p8 = por %p699_p7, %p698_p5 }
  0x43   : > { %p701_p10 = pnand %p700_p8, %p694_p4 }
  0xc1   : > { %v226_v21 = vpop.xlane.xlu0 %225 }
  0xc2   : > { %v232_v24 = vpop.xlane.xlu1 %231  ;;  %v236_v26 = vmul.f32 0.00390625, %v226_v21 }
  0xc3   : > { %v238_v29 = vmul.f32 0.00390625, %v232_v24 }
  0xc4   : > { %v254_v35 = vrot.slane %v236_v26, %v253_v25 }
  0xc5   : > { %v229_v30 = vpop.xlane.xlu0 %228  ;;  %v266_v37 = vrot.slane %v238_v29, %v265_v28 }
  0xc6   : > { %v237_v32 = vmul.f32 0.00390625, %v229_v30  ;;  %v235_v33 = vpop.xlane.xlu1 %234 }
  0xc7   : > { %v239_v34 = vmul.f32 0.00390625, %v235_v33 }
  0xc8   : > { %v259_v36 = vrot.slane %v237_v32, %v258_v27 }
  0xc9   : > { %v273_v38 = vrot.slane %v239_v34, %v272_v31 }
  0xca   : > { %v261_v39 = vsel %vm260_vm1, %v259_v36, %v254_v35 }
  0xcb   : > { %v268_v40 = vsel %vm267_vm2, %v266_v37, %v261_v39 }
  0xcc   : > { %v275_v41 = vsel %vm274_vm3, %v273_v38, %v268_v40 }
  0xcd   : > { %596 = vmatmul.mubr.msk.f32.vlgmr.msra.gmra.mxu0 %vm276_vm4, %v275_v41 }
 0x18d   : > { %v345_v44 = vpop.f32.mrf.mxu0 }
 0x18e   : > { %v346_v45 = vadd.f32 %v345_v44, %v244_v43 }
 0x18f   : > { %v597_v46 = vpop.f32.mrf.mxu0 }
 0x190   : > { %v349_v47 = vmax.f32 %v346_v45, 0.0 }
 0x192   : > { %601 = vmatmul.mubr.msk.f32.vlgmr.msra.gmra.mxu1 %vm351_vm5, %v349_v47 }
 0x252   : > { %v421_v48 = vpop.f32.mrf.mxu1 }
 0x253   : > { %v571_v49 = vmul.f32 -1.442695, %v421_v48 }
 0x254   : > { %v602_v50 = vpop.f32.mrf.mxu1 }
 0x255   : > { %655 = vpow2.f32 %v571_v49 }
 0x262   : > { %v656_v51 = vpop.eup %655 }
 0x263   : > { %v428_v52 = vadd.f32 1.0, %v656_v51 }
 0x265   : > { %657 = vrcp.f32 %v428_v52 }
 0x272   : > { %v658_v53 = vpop.eup %657 }
 0x273   : > { %v572_v54 = vmul.f32 -1.442695, %v658_v53 }
 0x275   : > { %659 = vpow2.f32 %v572_v54 }
 0x282   : > { %v660_v55 = vpop.eup %659 }
 0x283   : > { %v434_v56 = vadd.f32 1.0, %v660_v55 }
 0x285   : > { %661 = vrcp.f32 %v434_v56 }
 0x292   : > { %v662_v58 = vpop.eup %661 }
 0x293   : > { %v437_v59 = vadd.f32 1.0, %v662_v58 }
 0x295   : > { %v441_v60 = vrot.slane %v437_v59, %v440_v57 }
 0x297   : > { %447 = vbcast.lane.b32.xlu1 %v441_v60, 264  ;;  %443 = vbcast.lane.b32.xlu0 %v441_v60, 256 }
 0x29b   : > { %451 = vbcast.lane.b32.xlu1 %v441_v60, 272 }
 0x29f   : > { %455 = vbcast.lane.b32.xlu1 %v441_v60, 280 }
 0x309   : > { %v448_v61 = vpop.permute.xlu1 %447  ;;  %v444_v62 = vpop.permute.xlu0 %443 }
 0x30a   : > { %v459_v63 = vmul.f32 %v448_v61, %v907_v5  ;;  %v460_v3 = vmul.f32 %v448_v61, %v909_v6  ;;  %v457_v7 = vmul.f32 %v444_v62, %v897_v0  ;;  %v458_v10 = vmul.f32 %v444_v62, %v899_v1 }
 0x30c   : > { %467 = vst [vmem:[%s215_s9 + $0x10] sm:$0xff] %v459_v63  ;;  %468 = vst [vmem:[%s215_s9 + $0x18] sm:$0xff] %v460_v3 }
 0x30d   : > { %465 = vst [vmem:[%s215_s9] sm:$0xff] %v457_v7  ;;  %466 = vst [vmem:[%s215_s9 + $0x8] sm:$0xff] %v458_v10  ;;  %v452_v11 = vpop.permute.xlu1 %451 }
 0x30e   : > { %v461_v12 = vmul.f32 %v452_v11, %v901_v2  ;;  %v462_v5 = vmul.f32 %v452_v11, %v905_v4 }
 0x310   : > { %469 = vst [vmem:[%s215_s9 + $0x20] sm:$0xff] %v461_v12  ;;  %470 = vst [vmem:[%s215_s9 + $0x28] sm:$0xff] %v462_v5 }
 0x311   : > { %v456_v0 = vpop.permute.xlu1 %455 }
 0x312   : > { %v463_v1 = vmul.f32 %v456_v0, %v913_v8  ;;  %v464_v2 = vmul.f32 %v456_v0, %v915_v9 }
 0x314   : > { %471 = vst [vmem:[%s215_s9 + $0x30] sm:$0xff] %v463_v1  ;;  %472 = vst [vmem:[%s215_s9 + $0x38] sm:$0xff] %v464_v2 }
 0x315   : > { %704 = shalt.err (!%p701_p10)
}
 0x316   : > { %s705_s25 = scalar_lea.hbm %s953_s8, 1024  ;;  %s709_s5 = scalar_lea.hbm %s1002_s4, 2048 }
 0x317   : > { %p706_p0 = scmp.ne.s32.totalorder %s953_s8, %s705_s25  ;;  %p710_p1 = scmp.lt.s32.totalorder %s953_s8, %s1002_s4 }
 0x318   : > { %p711_p3 = scmp.lt.s32.totalorder %s709_s5, %s705_s25 }
 0x319   : > { %p707_p2 = pnand %p706_p0, %p1011_p12 }
 0x31a   : > { %p712_p6 = por %p711_p3, %p710_p1 }
 0x31b   : > { %p708_p9 = pneg %p707_p2 }
 0x31d   : > { %p713_p11 = pnand %p712_p6, %p708_p9 }
 0x31f   : > { %716 = shalt.err (!%p713_p11)
}
 0x320   : > { %s763_s9 = smov 256   ;;  %s764_s22 = smov 16  }
 0x321   : > { %605 = dma.vmem_to_hbm [thread:$0]  (%p1011_p12), %s948_s20, 1024, %s953_s8, %s474_s19, %s763_s9, %s763_s9, %s764_s22  }
 0x322 PF: > { %s502_s14 = sand.u32 1, %s743_s15   ;;  %p1012_p13 = scmp.ne.s32.totalorder %s1008_s28, 0 }
 0x323   : > { %p1013_p4 = scmp.ge.s32.totalorder %s755_s18, 2  ;;  %s503_s26 = scalar_lea.sflag [#allocation4], %s502_s14 }
 0x325   : > { %p612_p5 = pnand %p1013_p4, %p1012_p13 }
 0x327   : > { %p613_p7 = pneg %p612_p5 }
 0x329   : > { %738 = dma.done.wait (%p613_p7), %s503_s26, 1024  }
 0x32a   : > { %740 = vsyncadd (%p613_p7), %s503_s26, 4294966272  ;;  %p17_p8 = scmp.ge.s32.totalorder %s815_s21, 4   ;;  %s1014_s15 = smov %s747_s16 }
 0x32b   : > { %s1015_s16 = smov %s751_s17  ;;  %s1016_s17 = smov %s827_s24 }
 0x32c   : > { %s1017_s18 = smov %s815_s21  ;;  %19 = sbr.rel (!%p17_p8) target bundleno = 5 (0x5), region = 81 }
 0x331   :  { %508 = vsyncpa [#allocation3], 1 }
 0x332   :  { %510 = vsyncpa [#allocation3 + $0x1], 1 }
 0x333   :  { %511 = vsyncpa [#allocation4], 1 }
 0x334   :  { %513 = vsyncpa [#allocation4 + $0x1], 1 }

</bundles_post_ra>
